<compile_context>
chip_gen: v6e
topology: v6e:2x2x1
jax: 0.10.0
libtpu: 0.0.40
codegen_flags: <defaults>
</compile_context>

<pallas_src>
import math

import jax
import jax.numpy as jnp
from jax.experimental import pallas as pl
from jax.experimental.pallas import tpu as pltpu


# --------------------------------------------------------------------------- #
# Kernel (gridless, fully VMEM-resident)
# --------------------------------------------------------------------------- #
def gcn_kernel(adj_ref, w1_ref, b1_ref, w3_ref, b3_ref, out_ref):
    """Whole GCN forward in one VMEM-resident kernel (no grid)."""
    adj = adj_ref[...]                                   # [Vp, Vp], compute dtype

    # gcn1: x is the identity matrix, so x @ W1 == W1.
    h1 = jnp.dot(adj, w1_ref[...], preferred_element_type=jnp.float32)
    h1 = jnp.maximum(h1 + b1_ref[...], 0.0)              # bias + ReLU, f32

    # TODO(synk): nn.Dropout(p=0.3) is stochastic in training mode; implemented
    # here as eval-mode identity (deterministic, inference-only forward).

    # gcn3 reassociated: (adj @ h1) @ W3 + b3  ==  adj @ (h1 @ W3) + b3.
    if h1.dtype != adj.dtype:          # trace-time branch; no-op on the f32 path
        h1 = h1.astype(adj.dtype)
    t = jnp.dot(adj, h1, preferred_element_type=jnp.float32)
    if t.dtype != w3_ref.dtype:        # trace-time branch; no-op on the f32 path
        t = t.astype(w3_ref.dtype)
    out = jnp.dot(t, w3_ref[...], preferred_element_type=jnp.float32)
    out_ref[...] = out + b3_ref[...]


_VMEM = pl.BlockSpec(memory_space=pltpu.MemorySpace.VMEM)


@jax.jit
def gcn_forward_padded(adj_p, w1_p, b1_p, w3_p, b3_p):
    """Hot path: runs the fused GCN forward on pre-padded, pre-cast params.

    Returns the padded [Vp, Dp] float32 output (lane-dense; no post-call slice).
    """
    Vp = adj_p.shape[0]
    Dp = w1_p.shape[1]
    return pl.pallas_call(
        gcn_kernel,
        out_shape=jax.ShapeDtypeStruct((Vp, Dp), jnp.float32),
        in_specs=[_VMEM, _VMEM, _VMEM, _VMEM, _VMEM],
        out_specs=_VMEM,
    )(adj_p, w1_p, b1_p, w3_p, b3_p)


# --------------------------------------------------------------------------- #
# One-time parameter preparation (hoisted out of the hot path)
# --------------------------------------------------------------------------- #
def _round_up(n, m):
    return ((n + m - 1) // m) * m


def prepare_gcn_params(adj, w1, b1, w3, b3, *,
                       compute_dtype=jnp.float32, lane=128, sublane=8):
    """Pad V to a sublane multiple and D to a lane multiple; cast MXU inputs.

    Zero padding rows/columns contribute nothing to the valid output rows, so
    the math on the top-left [V, D] block is unchanged.  Call this once at
    weight-load time and reuse the returned arrays for every forward call.
    """
    V = adj.shape[0]
    D = w1.shape[1]
    Vp = _round_up(max(V, sublane), sublane)
    Dp = _round_up(max(D, lane), lane)

    adj_p = jnp.pad(adj, ((0, Vp - V), (0, Vp - V))).astype(compute_dtype)
    w1_p = jnp.pad(w1, ((0, Vp - V), (0, Dp - D))).astype(compute_dtype)
    b1_p = jnp.pad(b1, ((0, 0), (0, Dp - D))).astype(jnp.float32)
    w3_p = jnp.pad(w3, ((0, Dp - D), (0, Dp - D))).astype(compute_dtype)
    b3_p = jnp.pad(b3, ((0, 0), (0, Dp - D))).astype(jnp.float32)
    return adj_p, w1_p, b1_p, w3_p, b3_p


# --------------------------------------------------------------------------- #
# Host-side glue matching the PyTorch module
# --------------------------------------------------------------------------- #
def row_normalize(mx):
    """Row-normalize (matches GCN.normalize: D^-1 @ mx, inf -> 0)."""
    rowsum = jnp.sum(mx, axis=1)
    r_inv = jnp.where(rowsum > 0, 1.0 / rowsum, 0.0)
    return mx * r_inv[:, None]


def init_gc_params(key, in_features, out_features):
    """Deterministic init mimicking pyGCN GraphConvolution.reset_parameters."""
    stdv = 1.0 / math.sqrt(out_features)
    kw, kb = jax.random.split(key)
    w = jax.random.uniform(
        kw, (in_features, out_features), jnp.float32, minval=-stdv, maxval=stdv
    )
    b = jax.random.uniform(
        kb, (1, out_features), jnp.float32, minval=-stdv, maxval=stdv
    )
    return w, b


if __name__ == "__main__":
    voc_size = 19   # V (deliberately not a multiple of 8 to exercise V padding)
    emb_dim = 32    # D

    key = jax.random.PRNGKey(0)
    k_adj, k1, k3 = jax.random.split(key, 3)

    # Synthetic symmetric binary DDI adjacency (zero diagonal).
    raw = (jax.random.uniform(k_adj, (voc_size, voc_size)) > 0.7).astype(jnp.float32)
    ddi_adj = jnp.maximum(raw, raw.T) * (1.0 - jnp.eye(voc_size, dtype=jnp.float32))

    # adj = normalize(ddi_adj + I)
    adj = row_normalize(ddi_adj + jnp.eye(voc_size, dtype=jnp.float32))

    # GraphConvolution parameters (gcn1: V->D, gcn3: D->D). gcn2 unused in forward.
    w1, b1 = init_gc_params(k1, voc_size, emb_dim)
    w3, b3 = init_gc_params(k3, emb_dim, emb_dim)

    # One-time preparation (padding + casts hoisted off the hot path).
    params = prepare_gcn_params(adj, w1, b1, w3, b3)

    # Hot path: single pallas_call on pre-padded constants, padded output.
    out_padded = gcn_forward_padded(*params)
    out_padded = jax.block_until_ready(out_padded)

    # Sanity check against a pure-JAX f32 reference of the same math
    # (slice the padded output only here, for the comparison).
    x = jnp.eye(voc_size, dtype=jnp.float32)
    h1_ref = jnp.maximum(adj @ (x @ w1) + b1, 0.0)
    ref = adj @ (h1_ref @ w3) + b3
    out = out_padded[:voc_size, :emb_dim]

    assert out_padded.shape == (24, 128)          # Vp=round_up(19,8), Dp=128
    assert out.shape == (voc_size, emb_dim)
    assert jnp.allclose(out, ref, atol=1e-5, rtol=1e-5)

    print("KERNEL_OK")
</pallas_src>

<mosaic_0001>
module attributes {stable_mosaic.version = 11 : i64} {
  func.func @gcn_kernel(%arg0: memref<24x24xf32, #tpu.memory_space<vmem>>, %arg1: memref<24x128xf32, #tpu.memory_space<vmem>>, %arg2: memref<1x128xf32, #tpu.memory_space<vmem>>, %arg3: memref<128x128xf32, #tpu.memory_space<vmem>>, %arg4: memref<1x128xf32, #tpu.memory_space<vmem>>, %arg5: memref<24x128xf32, #tpu.memory_space<vmem>>) attributes {dimension_semantics = [], scalar_prefetch = 0 : i64, scratch_operands = 0 : i64, tpu.core_type = #tpu.core_type<tc>} {
    %c0 = arith.constant 0 : index
    %c0_0 = arith.constant 0 : index
    %0 = vector.load %arg0[%c0, %c0_0] : memref<24x24xf32, #tpu.memory_space<vmem>>, vector<24x24xf32>
    %c0_1 = arith.constant 0 : index
    %c0_2 = arith.constant 0 : index
    %1 = vector.load %arg1[%c0_1, %c0_2] : memref<24x128xf32, #tpu.memory_space<vmem>>, vector<24x128xf32>
    %cst = arith.constant dense<0.000000e+00> : vector<24x128xf32>
    %2 = tpu.matmul %0, %1, %cst {dimension_numbers = #tpu.dot_dimension_numbers<[1], [0], [0], [1], [0, 0, 1, 1], [], []>} : vector<24x24xf32>, vector<24x128xf32>, vector<24x128xf32> -> vector<24x128xf32>
    %c0_3 = arith.constant 0 : index
    %c0_4 = arith.constant 0 : index
    %3 = vector.load %arg2[%c0_3, %c0_4] : memref<1x128xf32, #tpu.memory_space<vmem>>, vector<1x128xf32>
    %4 = vector.broadcast %3 : vector<1x128xf32> to vector<24x128xf32>
    %5 = arith.addf %2, %4 : vector<24x128xf32>
    %cst_5 = arith.constant 0.000000e+00 : f32
    %6 = vector.broadcast %cst_5 : f32 to vector<24x128xf32>
    %7 = arith.maximumf %5, %6 : vector<24x128xf32>
    %cst_6 = arith.constant dense<0.000000e+00> : vector<24x128xf32>
    %8 = tpu.matmul %0, %7, %cst_6 {dimension_numbers = #tpu.dot_dimension_numbers<[1], [0], [0], [1], [0, 0, 1, 1], [], []>} : vector<24x24xf32>, vector<24x128xf32>, vector<24x128xf32> -> vector<24x128xf32>
    %c0_7 = arith.constant 0 : index
    %c0_8 = arith.constant 0 : index
    %9 = vector.load %arg3[%c0_7, %c0_8] : memref<128x128xf32, #tpu.memory_space<vmem>>, vector<128x128xf32>
    %cst_9 = arith.constant dense<0.000000e+00> : vector<24x128xf32>
    %10 = tpu.matmul %8, %9, %cst_9 {dimension_numbers = #tpu.dot_dimension_numbers<[1], [0], [0], [1], [0, 0, 1, 1], [], []>} : vector<24x128xf32>, vector<128x128xf32>, vector<24x128xf32> -> vector<24x128xf32>
    %c0_10 = arith.constant 0 : index
    %c0_11 = arith.constant 0 : index
    %11 = vector.load %arg4[%c0_10, %c0_11] : memref<1x128xf32, #tpu.memory_space<vmem>>, vector<1x128xf32>
    %12 = vector.broadcast %11 : vector<1x128xf32> to vector<24x128xf32>
    %13 = arith.addf %10, %12 : vector<24x128xf32>
    %c0_12 = arith.constant 0 : index
    %c0_13 = arith.constant 0 : index
    %14 = vector.load %arg5[%c0_12, %c0_13] : memref<24x128xf32, #tpu.memory_space<vmem>>, vector<24x128xf32>
    tpu.vector_store %arg5[%c0_12, %c0_13], %13 {strides = array<i32>} : memref<24x128xf32, #tpu.memory_space<vmem>>, vector<24x128xf32>,
    return
  }
}

</mosaic_0001>

<bundles_post_ra>
// kernel: gcn_forward_padded.1
= control target key start
LH: loop header
LB: loop body
LE: loop exit
PB: predicated region body
PF: predicated region fallthrough
CT: control target
= control target key end

     0   :  { %10 = vsyncpa [#allocation3], 0  ;;  %s702_s0 = inlined_call_operand.hbm [shape: f32[24,24], index: 0, kind: input, shape index: {}]   ;;  %s703_s1 = inlined_call_operand.hbm [shape: f32[24,128], index: 1, kind: input, shape index: {}]   ;;  %s704_s2 = inlined_call_operand.vmem [shape: f32[1,128], index: 2, kind: input, shape index: {}]   ;;  %s705_s3 = inlined_call_operand.hbm [shape: f32[128,128], index: 3, kind: input, shape index: {}]   ;;  %s706_s4 = inlined_call_operand.vmem [shape: f32[1,128], index: 4, kind: input, shape index: {}]   ;;  %s707_s5 = inlined_call_operand.hbm [shape: f32[24,128], index: 5, kind: output, shape index: {}]  }
   0x1   :  { %11 = vsyncpa [#allocation6], 0 }
   0x2   :  { %12 = vsyncpa [#allocation4], 0  ;;  %s576_s18 = smov [#allocation5]   ;;  %s577_s20 = smov [#allocation2]  }
   0x3   :  { %s30_s19 = sshll.u32 %s576_s18, 4  ;;  %s18_s21 = sshll.u32 %s577_s20, 4  ;;  %s31_s19 = int_to_ptr.vmem [resolvable:$true] %s30_s19  ;;  %s19_s21 = int_to_ptr.vmem [resolvable:$true] %s18_s21 }
   0x4   :  { %s498_s22 = scalar_lea.vmem %s31_s19, 384  ;;  %p503_p1 = scmp.lt.s32.totalorder %s31_s19, %s31_s19 }
   0x5   :  { %p499_p0 = scmp.ne.s32.totalorder %s31_s19, %s498_s22  ;;  %p504_p2 = scmp.lt.s32.totalorder %s498_s22, %s498_s22 }
   0x7   :  { %p505_p3 = por %p504_p2, %p503_p1 }
   0x9   :  { %p506_p4 = pnand %p505_p3, %p499_p0 }
   0xb   :  { %509 = shalt.err (!%p506_p4)
}
   0xc   :  { %s578_s23 = smov 128   ;;  %s579_s24 = smov 8  }
   0xd   :  { %36 = dma.hbm_to_vmem [thread:$0]  %s703_s1, 384, %s31_s19, [#allocation6], %s578_s23, %s578_s23, %s579_s24  }
   0xe   :  { %s518_s27 = scalar_lea.vmem %s19_s21, 384  ;;  %p523_p6 = scmp.lt.s32.totalorder %s19_s21, %s19_s21 }
   0xf   :  { %p519_p5 = scmp.ne.s32.totalorder %s19_s21, %s518_s27  ;;  %p524_p7 = scmp.lt.s32.totalorder %s518_s27, %s518_s27 }
  0x11   :  { %p525_p8 = por %p524_p7, %p523_p6 }
  0x13   :  { %p526_p9 = pnand %p525_p8, %p519_p5 }
  0x15   :  { %529 = shalt.err (!%p526_p9)
}
  0x16   :  { %24 = dma.hbm_to_vmem [thread:$0]  %s702_s0, 384, %s19_s21, [#allocation3], %s578_s23, %s578_s23, %s579_s24  }
  0x17   :  { %s580_s30 = smov [#allocation7]  }
  0x18   :  { %s44_s6 = sshll.u32 %s580_s30, 4  ;;  %s45_s6 = int_to_ptr.vmem [resolvable:$true] %s44_s6 }
  0x19   :  { %s538_s7 = scalar_lea.vmem %s45_s6, 2048  ;;  %p543_p11 = scmp.lt.s32.totalorder %s45_s6, %s45_s6 }
  0x1a   :  { %p539_p10 = scmp.ne.s32.totalorder %s45_s6, %s538_s7  ;;  %p544_p12 = scmp.lt.s32.totalorder %s538_s7, %s538_s7 }
  0x1c   :  { %p545_p13 = por %p544_p12, %p543_p11 }
  0x1e   :  { %p546_p0 = pnand %p545_p13, %p539_p10 }
  0x20   :  { %549 = shalt.err (!%p546_p0)
}
  0x21   :  { %50 = dma.hbm_to_vmem [thread:$0]  %s705_s3, 2048, %s45_s6, [#allocation6], %s578_s23, %s578_s23, %s579_s24  }
  0x22   :  { %570 = dma.done.wait [#allocation3], 384  }
  0x23   :  { %571 = vsyncadd [#allocation3], 4294966912 }
  0x24   :  { %572 = dma.done.wait [#allocation6], 2432  }
  0x25   :  { %573 = vsyncadd [#allocation6], 4294964864  ;;  %v581_v0 = vmov 0.0   ;;  %vm582_vm0 = vmmov 0   ;;  %v67_v1 = vld [vmem:[#allocation5 + $0x10] sm:$0xff]  ;;  %v66_v2 = vld [vmem:[#allocation5 + $0x8] sm:$0xff] }
  0x26   :  { %411 = vmatprep.subr.mxu1 %v581_v0  ;;  %417 = vmatprep.mubr.msk.f32.mxu1 %vm582_vm0, %v581_v0  ;;  %v65_v3 = vld [vmem:[#allocation5] sm:$0xff]  ;;  %v639_v4 = vld [vmem:[#allocation2] sm:$0xff]  ;;  %vm75_vm1 = vcmask 195584   ;;  %v647_v5 = vld [vmem:[#allocation2 + $0x8] sm:$0xff]  ;;  %s583_s10 = smov [#allocation8]  }
  0x27   :  { %441 = vmatprep.subr.mxu0 %v581_v0  ;;  %473 = vmatprep.mubr.msk.f32.mxu0 %vm582_vm0, %v581_v0  ;;  %v653_v6 = vld [vmem:[#allocation2 + $0x10] sm:$0xff]  ;;  %v263_v7 = vld [vmem:[#allocation7 + $0x78] sm:$0xff]  ;;  %v262_v8 = vld [vmem:[#allocation7 + $0x70] sm:$0xff]  ;;  %s359_s11 = sshll.u32 %s583_s10, 4  ;;  %s360_s11 = int_to_ptr.vmem [resolvable:$true] %s359_s11 }
  0x28   :  { %412 = vmatpush3.msra.mxu1 %v67_v1  ;;  %442 = vmatpush3.msra.mxu0 %v263_v7  ;;  %v261_v9 = vld [vmem:[#allocation7 + $0x68] sm:$0xff]  ;;  %v260_v10 = vld [vmem:[#allocation7 + $0x60] sm:$0xff]  ;;  %v259_v11 = vld [vmem:[#allocation7 + $0x58] sm:$0xff]  ;;  %s550_s12 = scalar_lea.vmem %s360_s11, 384  ;;  %p555_p2 = scmp.lt.s32.totalorder %s360_s11, %s360_s11 }
  0x29   :  { %413 = vmatprep.subr.mxu1 %v581_v0  ;;  %443 = vmatprep.subr.mxu0 %v581_v0  ;;  %v258_v12 = vld [vmem:[#allocation7 + $0x50] sm:$0xff]  ;;  %v257_v13 = vld [vmem:[#allocation7 + $0x48] sm:$0xff]  ;;  %v256_v14 = vld [vmem:[#allocation7 + $0x40] sm:$0xff]  ;;  %p551_p1 = scmp.ne.s32.totalorder %s360_s11, %s550_s12  ;;  %p556_p3 = scmp.lt.s32.totalorder %s550_s12, %s550_s12 }
  0x2a   :  { %414 = vmatpush3.msra.mxu1 %v66_v2  ;;  %444 = vmatpush3.msra.mxu0 %v262_v8  ;;  %v255_v15 = vld [vmem:[#allocation7 + $0x38] sm:$0xff]  ;;  %v254_v16 = vld [vmem:[#allocation7 + $0x30] sm:$0xff]  ;;  %v253_v17 = vld [vmem:[#allocation7 + $0x28] sm:$0xff] }
  0x2b   :  { %415 = vmatprep.subr.mxu1 %v581_v0  ;;  %445 = vmatprep.subr.mxu0 %v581_v0  ;;  %v252_v18 = vld [vmem:[#allocation7 + $0x20] sm:$0xff]  ;;  %v251_v19 = vld [vmem:[#allocation7 + $0x18] sm:$0xff]  ;;  %v250_v20 = vld [vmem:[#allocation7 + $0x10] sm:$0xff]  ;;  %p557_p4 = por %p556_p3, %p555_p2 }
  0x2c   :  { %416 = vmatpush3.msra.mxu1 %v65_v3  ;;  %446 = vmatpush3.msra.mxu0 %v261_v9  ;;  %v249_v21 = vld [vmem:[#allocation7 + $0x8] sm:$0xff]  ;;  %v372_v26 = vld [vmem:[%s704_s2] ss:$0 sm:$0xff]  ;;  %v248_v35 = vld [vmem:[#allocation7] sm:$0xff] }
  0x2d   :  { %418 = vmatmul.mubr.msk.f32.vlgmr.msra.gmra.mxu1 %vm75_vm1, %v639_v4  ;;  %426 = vmatprep.subr.mxu1 %v581_v0  ;;  %v379_v42 = vld [vmem:[%s706_s4] ss:$0 sm:$0xff]  ;;  %p558_p5 = pnand %p557_p4, %p551_p1 }
  0x2e   :  { %420 = vmatprep.mubr.msk.f32.mxu1 %vm582_vm0, %v581_v0  ;;  %447 = vmatprep.subr.mxu0 %v581_v0 }
  0x2f   :  { %448 = vmatpush3.msra.mxu0 %v260_v10 }
  0x30   :  { %449 = vmatprep.subr.mxu0 %v581_v0 }
  0x31   :  { %421 = vmatmul.mubr.msk.f32.gmra.mxu1 %vm75_vm1, %v647_v5  ;;  %450 = vmatpush3.msra.mxu0 %v259_v11 }
  0x32   :  { %423 = vmatprep.mubr.msk.f32.mxu1 %vm582_vm0, %v581_v0  ;;  %451 = vmatprep.subr.mxu0 %v581_v0 }
  0x33   :  { %452 = vmatpush3.msra.mxu0 %v258_v12 }
  0x34   :  { %453 = vmatprep.subr.mxu0 %v581_v0 }
  0x35   :  { %424 = vmatmul.mubr.msk.f32.gmra.mxu1 %vm75_vm1, %v653_v6  ;;  %454 = vmatpush3.msra.mxu0 %v257_v13 }
  0x36   :  { %432 = vmatprep.mubr.msk.f32.mxu1 %vm582_vm0, %v581_v0  ;;  %455 = vmatprep.subr.mxu0 %v581_v0 }
  0x37   :  { %456 = vmatpush3.msra.mxu0 %v256_v14 }
  0x38   :  { %457 = vmatprep.subr.mxu0 %v581_v0 }
  0x39   :  { %458 = vmatpush3.msra.mxu0 %v255_v15 }
  0x3a   :  { %459 = vmatprep.subr.mxu0 %v581_v0 }
  0x3b   :  { %460 = vmatpush3.msra.mxu0 %v254_v16 }
  0x3c   :  { %461 = vmatprep.subr.mxu0 %v581_v0 }
  0x3d   :  { %462 = vmatpush3.msra.mxu0 %v253_v17 }
  0x3e   :  { %463 = vmatprep.subr.mxu0 %v581_v0 }
  0x3f   :  { %464 = vmatpush3.msra.mxu0 %v252_v18 }
  0x40   :  { %465 = vmatprep.subr.mxu0 %v581_v0 }
  0x41   :  { %466 = vmatpush3.msra.mxu0 %v251_v19 }
  0x42   :  { %467 = vmatprep.subr.mxu0 %v581_v0 }
  0x43   :  { %468 = vmatpush3.msra.mxu0 %v250_v20 }
  0x44   :  { %469 = vmatprep.subr.mxu0 %v581_v0 }
  0x45   :  { %470 = vmatpush3.msra.mxu0 %v249_v21 }
  0x46   :  { %471 = vmatprep.subr.mxu0 %v581_v0 }
  0x47   :  { %472 = vmatpush3.msra.mxu0 %v248_v35 }
  0xed   :  { %v151_v22 = vpop.f32.mrf.mxu1 }
  0xee   :  { %v152_v31 = vadd.f32 %v372_v26, %v151_v22 }
  0xef   :  { %v419_v23 = vpop.f32.mrf.mxu1 }
  0xf0   :  { %v165_v34 = vmax.f32 %v152_v31, 0.0 }
  0xf1   :  { %v156_v24 = vpop.f32.mrf.mxu1 }
  0xf2   :  { %v157_v28 = vadd.f32 %v372_v26, %v156_v24 }
  0xf3   :  { %v422_v25 = vpop.f32.mrf.mxu1 }
  0xf4   :  { %v166_v33 = vmax.f32 %v157_v28, 0.0 }
  0xf5   :  { %v161_v27 = vpop.f32.mrf.mxu1 }
  0xf6   :  { %v162_v29 = vadd.f32 %v372_v26, %v161_v27 }
  0xf7   :  { %v425_v30 = vpop.f32.mrf.mxu1 }
  0xf8   :  { %v167_v32 = vmax.f32 %v162_v29, 0.0 }
  0xfa   :  { %427 = vmatpush3.msra.mxu1 %v167_v32 }
  0xfb   :  { %428 = vmatprep.subr.mxu1 %v581_v0 }
  0xfc   :  { %429 = vmatpush3.msra.mxu1 %v166_v33 }
  0xfd   :  { %430 = vmatprep.subr.mxu1 %v581_v0 }
  0xfe   :  { %431 = vmatpush3.msra.mxu1 %v165_v34 }
  0xff   :  { %433 = vmatmul.mubr.msk.f32.vlgmr.msra.gmra.mxu1 %vm75_vm1, %v639_v4 }
 0x100   :  { %435 = vmatprep.mubr.msk.f32.mxu1 %vm582_vm0, %v581_v0 }
 0x103   :  { %436 = vmatmul.mubr.msk.f32.gmra.mxu1 %vm75_vm1, %v647_v5 }
 0x104   :  { %438 = vmatprep.mubr.msk.f32.mxu1 %vm582_vm0, %v581_v0 }
 0x107   :  { %439 = vmatmul.mubr.msk.f32.gmra.mxu1 %vm75_vm1, %v653_v6 }
 0x1bf   :  { %v234_v36 = vpop.f32.mrf.mxu1 }
 0x1c0   :  { %474 = vmatmul.mubr.f32.vlgmr.msra.gmra.mxu0 %v234_v36 }
 0x1c1   :  { %v434_v37 = vpop.f32.mrf.mxu1  ;;  %476 = vmatprep.mubr.msk.f32.mxu0 %vm582_vm0, %v581_v0 }
 0x1c3   :  { %v239_v38 = vpop.f32.mrf.mxu1 }
 0x1c4   :  { %477 = vmatmul.mubr.f32.gmra.mxu0 %v239_v38 }
 0x1c5   :  { %v437_v39 = vpop.f32.mrf.mxu1  ;;  %479 = vmatprep.mubr.msk.f32.mxu0 %vm582_vm0, %v581_v0 }
 0x1c7   :  { %v244_v40 = vpop.f32.mrf.mxu1 }
 0x1c8   :  { %480 = vmatmul.mubr.f32.gmra.mxu0 %v244_v40 }
 0x1c9   :  { %v440_v41 = vpop.f32.mrf.mxu1 }
 0x280   :  { %v337_v43 = vpop.f32.mrf.mxu0 }
 0x281   :  { %v338_v44 = vadd.f32 %v379_v42, %v337_v43 }
 0x282   :  { %v475_v45 = vpop.f32.mrf.mxu0 }
 0x283   :  { %351 = vst [vmem:[#allocation8] sm:$0xff] %v338_v44 }
 0x284   :  { %v342_v46 = vpop.f32.mrf.mxu0 }
 0x285   :  { %v343_v47 = vadd.f32 %v379_v42, %v342_v46 }
 0x286   :  { %v478_v48 = vpop.f32.mrf.mxu0 }
 0x287   :  { %352 = vst [vmem:[#allocation8 + $0x8] sm:$0xff] %v343_v47 }
 0x288   :  { %v347_v49 = vpop.f32.mrf.mxu0 }
 0x289   :  { %v348_v50 = vadd.f32 %v379_v42, %v347_v49 }
 0x28a   :  { %v481_v51 = vpop.f32.mrf.mxu0 }
 0x28b   :  { %353 = vst [vmem:[#allocation8 + $0x10] sm:$0xff] %v348_v50 }
 0x28c   :  { %561 = shalt.err (!%p558_p5)
}
 0x28d   :  { %365 = dma.vmem_to_hbm [thread:$0]  %s360_s11, 384, %s707_s5, [#allocation4], %s578_s23, %s578_s23, %s579_s24  }
 0x28e   :  { %574 = dma.done.wait [#allocation4], 384  }
 0x28f   :  { %575 = vsyncadd [#allocation4], 4294966912 }
 0x290   :  { %369 = vsyncpa [#allocation3], 1 }
 0x291   :  { %370 = vsyncpa [#allocation6], 1 }
 0x292   :  { %371 = vsyncpa [#allocation4], 1 }

</bundles_post_ra>
